<compile_context>
chip_gen: v7x
topology: tpu7x:2x2x1
jax: 0.10.0
libtpu: 0.0.40
codegen_flags: <defaults>
</compile_context>

<pallas_src>
import jax
import jax.numpy as jnp
from jax.experimental import pallas as pl
from jax.experimental.pallas import tpu as pltpu


def _round_up(n, m):
    return ((n + m - 1) // m) * m


def _classifier_kernel(x_ref, w1_ref, b1_ref, w2_ref, b2_ref, out_ref):
    # hidden = ReLU(x @ W1 + b1)   -- bf16 into the MXU, f32 accumulate/elementwise
    x = x_ref[...].astype(jnp.bfloat16)
    h = jnp.dot(x, w1_ref[...], preferred_element_type=jnp.float32)
    h = jnp.maximum(h + b1_ref[...], 0.0)            # (tb, Hp) + (1, Hp) broadcast
    # (Dropout == identity in eval mode)
    # logits = hidden @ W2 + b2    (W2/b2 zero-padded to 128-lane multiple)
    logits = jnp.dot(h.astype(jnp.bfloat16), w2_ref[...],
                     preferred_element_type=jnp.float32)
    logits = logits + b2_ref[...]                    # (tb, Np) + (1, Np) broadcast
    # sigmoid = 1 / (1 + exp(-z)); clamp avoids inf; exp + approx recip on EUP
    p = jnp.exp(-jnp.maximum(logits, -60.0))
    out_ref[...] = pl.reciprocal(1.0 + p, approx=True).astype(out_ref.dtype)


def classifier_forward(x, w1, b1, w2, b2, *, block_b=1024):
    """x: (B, D_in); w1: (D_in, H); b1: (H,)/(1,H); w2: (H, nlabel); b2: (nlabel,)/(1,nlabel)."""
    B, D_in = x.shape
    H = w1.shape[1]
    nlabel = w2.shape[1]

    # --- lane-dense padding of hidden and output dims (multiples of 128) ----
    h_pad = _round_up(max(H, 128), 128)
    n_pad = _round_up(max(nlabel, 128), 128)

    w1p = jnp.zeros((D_in, h_pad), jnp.bfloat16).at[:, :H].set(
        w1.astype(jnp.bfloat16))
    b1p = jnp.zeros((1, h_pad), jnp.float32).at[:, :H].set(
        jnp.reshape(b1, (1, H)).astype(jnp.float32))
    w2p = jnp.zeros((h_pad, n_pad), jnp.bfloat16).at[:H, :nlabel].set(
        w2.astype(jnp.bfloat16))
    b2p = jnp.zeros((1, n_pad), jnp.float32).at[:, :nlabel].set(
        jnp.reshape(b2, (1, nlabel)).astype(jnp.float32))

    # --- batch tile sized from a VMEM budget (weights resident, x/out 2-buf) -
    weight_bytes = D_in * h_pad * 2 + h_pad * n_pad * 2 + (h_pad + n_pad) * 4
    budget = 12 * 1024 * 1024                              # conservative for v7x too
    per_row = 2 * (D_in * x.dtype.itemsize + n_pad * 4)    # double-buffered in + out
    max_tb = max(8, ((max(budget - 2 * weight_bytes, per_row * 8)) // per_row) // 8 * 8)
    tb = min(block_b, _round_up(B, 8), max_tb)
    B_pad = _round_up(B, tb)
    if B_pad != B:
        x = jnp.pad(x, ((0, B_pad - B), (0, 0)))
    grid = (B_pad // tb,)

    # --- advisory cost estimate ---------------------------------------------
    flops = 2 * B_pad * (D_in * h_pad + h_pad * n_pad)
    bytes_accessed = int(
        B_pad * D_in * x.dtype.itemsize      # x stream
        + D_in * h_pad * 2 + h_pad * n_pad * 2   # bf16 weights
        + h_pad * 4 + n_pad * 4              # f32 biases
        + B_pad * n_pad * 4)                 # f32 output
    cost = pl.CostEstimate(flops=flops,
                           transcendentals=B_pad * n_pad,
                           bytes_accessed=bytes_accessed)

    out = pl.pallas_call(
        _classifier_kernel,
        out_shape=jax.ShapeDtypeStruct((B_pad, n_pad), jnp.float32),
        grid_spec=pltpu.PrefetchScalarGridSpec(
            num_scalar_prefetch=0,
            grid=grid,
            in_specs=[
                pl.BlockSpec((tb, D_in), lambda i: (i, 0)),      # x tile
                pl.BlockSpec((D_in, h_pad), lambda i: (0, 0)),   # W1 padded (resident)
                pl.BlockSpec((1, h_pad), lambda i: (0, 0)),      # b1 padded (resident)
                pl.BlockSpec((h_pad, n_pad), lambda i: (0, 0)),  # W2 padded (resident)
                pl.BlockSpec((1, n_pad), lambda i: (0, 0)),      # b2 padded (resident)
            ],
            out_specs=pl.BlockSpec((tb, n_pad), lambda i: (i, 0)),
        ),
        compiler_params=pltpu.CompilerParams(
            dimension_semantics=("parallel",),
            vmem_limit_bytes=64 * 1024 * 1024),
        cost_estimate=cost,
    )(x, w1p, b1p, w2p, b2p)

    return out[:B, :nlabel]


def _ref_forward(x, w1, b1, w2, b2):
    return jax.nn.sigmoid(jnp.maximum(x @ w1 + jnp.reshape(b1, (1, -1)), 0.0)
                          @ w2 + jnp.reshape(b2, (1, -1)))


if __name__ == "__main__":
    # Small shapes consistent with the module: nlabel outputs, D_in features, H hidden.
    B, D_in, H, nlabel = 2, 32, 64, 8

    key = jax.random.PRNGKey(0)
    kx, kw1, kb1, kw2, kb2, kx2 = jax.random.split(key, 6)

    x = jax.random.normal(kx, (B, D_in), dtype=jnp.float32)

    # PyTorch Linear default init: U(-1/sqrt(fan_in), 1/sqrt(fan_in))
    lim1 = 1.0 / jnp.sqrt(jnp.float32(D_in))
    w1 = jax.random.uniform(kw1, (D_in, H), minval=-lim1, maxval=lim1, dtype=jnp.float32)
    b1 = jax.random.uniform(kb1, (1, H), minval=-lim1, maxval=lim1, dtype=jnp.float32)

    lim2 = 1.0 / jnp.sqrt(jnp.float32(H))
    w2 = jax.random.uniform(kw2, (H, nlabel), minval=-lim2, maxval=lim2, dtype=jnp.float32)
    b2 = jax.random.uniform(kb2, (1, nlabel), minval=-lim2, maxval=lim2, dtype=jnp.float32)

    # Check 1: tiny batch (single grid step, padded batch/label lanes).
    out = jax.block_until_ready(classifier_forward(x, w1, b1, w2, b2))
    ref = _ref_forward(x, w1, b1, w2, b2)
    assert out.shape == (B, nlabel)
    assert jnp.allclose(out, ref, atol=3e-2, rtol=3e-2), \
        f"max abs err {jnp.max(jnp.abs(out - ref))}"

    # Check 2: larger batch exercising multiple grid steps + batch padding.
    B2 = 300
    x2 = jax.random.normal(kx2, (B2, D_in), dtype=jnp.float32)
    out2 = jax.block_until_ready(
        classifier_forward(x2, w1, b1, w2, b2, block_b=128))
    ref2 = _ref_forward(x2, w1, b1, w2, b2)
    assert out2.shape == (B2, nlabel)
    assert jnp.allclose(out2, ref2, atol=3e-2, rtol=3e-2), \
        f"max abs err {jnp.max(jnp.abs(out2 - ref2))}"

    print("KERNEL_OK")
</pallas_src>

<mosaic_0001>
module attributes {stable_mosaic.version = 11 : i64} {
  func.func @_classifier_kernel(%arg0: i32, %arg1: memref<8x32xf32, #tpu.memory_space<vmem>>, %arg2: memref<32x128xbf16, #tpu.memory_space<vmem>>, %arg3: memref<1x128xf32, #tpu.memory_space<vmem>>, %arg4: memref<128x128xbf16, #tpu.memory_space<vmem>>, %arg5: memref<1x128xf32, #tpu.memory_space<vmem>>, %arg6: memref<8x128xf32, #tpu.memory_space<vmem>>) attributes {dimension_semantics = [#tpu.dimension_semantics<parallel>], iteration_bounds = array<i64: 1>, scalar_prefetch = 0 : i64, scratch_operands = 0 : i64, tpu.core_type = #tpu.core_type<tc>, window_params = [{transform_indices = @transform_0, window_bounds = array<i64: 8, 32>}, {pipeline_mode = #tpu.pipeline_mode<synchronous>, transform_indices = @transform_1, window_bounds = array<i64: 32, 128>}, {pipeline_mode = #tpu.pipeline_mode<synchronous>, transform_indices = @transform_2, window_bounds = array<i64: 1, 128>}, {pipeline_mode = #tpu.pipeline_mode<synchronous>, transform_indices = @transform_3, window_bounds = array<i64: 128, 128>}, {pipeline_mode = #tpu.pipeline_mode<synchronous>, transform_indices = @transform_4, window_bounds = array<i64: 1, 128>}, {transform_indices = @transform_5, window_bounds = array<i64: 8, 128>}]} {
    %c0 = arith.constant 0 : index
    %c0_0 = arith.constant 0 : index
    %0 = vector.load %arg1[%c0, %c0_0] : memref<8x32xf32, #tpu.memory_space<vmem>>, vector<8x32xf32>
    %1 = arith.truncf %0 : vector<8x32xf32> to vector<8x32xbf16>
    %c0_1 = arith.constant 0 : index
    %c0_2 = arith.constant 0 : index
    %2 = vector.load %arg2[%c0_1, %c0_2] : memref<32x128xbf16, #tpu.memory_space<vmem>>, vector<32x128xbf16>
    %cst = arith.constant dense<0.000000e+00> : vector<8x128xf32>
    %3 = tpu.matmul %1, %2, %cst {dimension_numbers = #tpu.dot_dimension_numbers<[1], [0], [0], [1], [0, 0, 1, 1], [], []>} : vector<8x32xbf16>, vector<32x128xbf16>, vector<8x128xf32> -> vector<8x128xf32>
    %c0_3 = arith.constant 0 : index
    %c0_4 = arith.constant 0 : index
    %4 = vector.load %arg3[%c0_3, %c0_4] : memref<1x128xf32, #tpu.memory_space<vmem>>, vector<1x128xf32>
    %5 = vector.broadcast %4 : vector<1x128xf32> to vector<8x128xf32>
    %6 = arith.addf %3, %5 : vector<8x128xf32>
    %cst_5 = arith.constant 0.000000e+00 : f32
    %7 = vector.broadcast %cst_5 : f32 to vector<8x128xf32>
    %8 = arith.maximumf %6, %7 : vector<8x128xf32>
    %9 = arith.truncf %8 : vector<8x128xf32> to vector<8x128xbf16>
    %c0_6 = arith.constant 0 : index
    %c0_7 = arith.constant 0 : index
    %10 = vector.load %arg4[%c0_6, %c0_7] : memref<128x128xbf16, #tpu.memory_space<vmem>>, vector<128x128xbf16>
    %cst_8 = arith.constant dense<0.000000e+00> : vector<8x128xf32>
    %11 = tpu.matmul %9, %10, %cst_8 {dimension_numbers = #tpu.dot_dimension_numbers<[1], [0], [0], [1], [0, 0, 1, 1], [], []>} : vector<8x128xbf16>, vector<128x128xbf16>, vector<8x128xf32> -> vector<8x128xf32>
    %c0_9 = arith.constant 0 : index
    %c0_10 = arith.constant 0 : index
    %12 = vector.load %arg5[%c0_9, %c0_10] : memref<1x128xf32, #tpu.memory_space<vmem>>, vector<1x128xf32>
    %13 = vector.broadcast %12 : vector<1x128xf32> to vector<8x128xf32>
    %14 = arith.addf %11, %13 : vector<8x128xf32>
    %cst_11 = arith.constant -6.000000e+01 : f32
    %15 = vector.broadcast %cst_11 : f32 to vector<8x128xf32>
    %16 = arith.maximumf %14, %15 : vector<8x128xf32>
    %cst_12 = arith.constant 0.000000e+00 : f32
    %17 = vector.broadcast %cst_12 : f32 to vector<8x128xf32>
    %18 = arith.subf %17, %16 : vector<8x128xf32>
    %19 = math.exp %18 : vector<8x128xf32>
    %cst_13 = arith.constant 1.000000e+00 : f32
    %20 = vector.broadcast %cst_13 : f32 to vector<8x128xf32>
    %21 = arith.addf %20, %19 : vector<8x128xf32>
    %22 = tpu.reciprocal %21 {approx = true} : vector<8x128xf32> -> vector<8x128xf32>
    %c0_14 = arith.constant 0 : index
    %c0_15 = arith.constant 0 : index
    %23 = vector.load %arg6[%c0_14, %c0_15] : memref<8x128xf32, #tpu.memory_space<vmem>>, vector<8x128xf32>
    tpu.vector_store %arg6[%c0_14, %c0_15], %22 {strides = array<i32>} : memref<8x128xf32, #tpu.memory_space<vmem>>, vector<8x128xf32>,
    return
  }
  func.func @transform_0(%arg0: i32) -> (i32, i32) {
    %c0_i32 = arith.constant 0 : i32
    %c0_i32_0 = arith.constant 0 : i32
    return %arg0, %c0_i32 : i32, i32
  }
  func.func @transform_1(%arg0: i32) -> (i32, i32) {
    %c0_i32 = arith.constant 0 : i32
    %c0_i32_0 = arith.constant 0 : i32
    %c0_i32_1 = arith.constant 0 : i32
    return %c0_i32, %c0_i32_0 : i32, i32
  }
  func.func @transform_2(%arg0: i32) -> (i32, i32) {
    %c0_i32 = arith.constant 0 : i32
    %c0_i32_0 = arith.constant 0 : i32
    %c0_i32_1 = arith.constant 0 : i32
    return %c0_i32, %c0_i32_0 : i32, i32
  }
  func.func @transform_3(%arg0: i32) -> (i32, i32) {
    %c0_i32 = arith.constant 0 : i32
    %c0_i32_0 = arith.constant 0 : i32
    %c0_i32_1 = arith.constant 0 : i32
    return %c0_i32, %c0_i32_0 : i32, i32
  }
  func.func @transform_4(%arg0: i32) -> (i32, i32) {
    %c0_i32 = arith.constant 0 : i32
    %c0_i32_0 = arith.constant 0 : i32
    %c0_i32_1 = arith.constant 0 : i32
    return %c0_i32, %c0_i32_0 : i32, i32
  }
  func.func @transform_5(%arg0: i32) -> (i32, i32) {
    %c0_i32 = arith.constant 0 : i32
    %c0_i32_0 = arith.constant 0 : i32
    return %arg0, %c0_i32 : i32, i32
  }
}

</mosaic_0001>

<bundles_post_ra>
// kernel: tpu_custom_call.1
= control target key start
LH: loop header
LB: loop body
LE: loop exit
PB: predicated region body
PF: predicated region fallthrough
CT: control target
= control target key end

     0   :  { %10 = vsyncpa [#allocation3], 0  ;;  %s619_s0 = inlined_call_operand.hbm [shape: f32[8,32], index: 0, kind: input, shape index: {}]   ;;  %s620_s1 = inlined_call_operand.hbm [shape: bf16[32,128], index: 1, kind: input, shape index: {}]   ;;  %s621_s2 = inlined_call_operand.hbm [shape: f32[1,128], index: 2, kind: input, shape index: {}]   ;;  %s622_s3 = inlined_call_operand.hbm [shape: bf16[128,128], index: 3, kind: input, shape index: {}]   ;;  %s623_s4 = inlined_call_operand.hbm [shape: f32[1,128], index: 4, kind: input, shape index: {}]   ;;  %s624_s5 = inlined_call_operand.hbm [shape: f32[8,128], index: 5, kind: output, shape index: {}]  }
   0x1   :  { %11 = vsyncpa [#allocation6], 0 }
   0x2   :  { %12 = vsyncpa [#allocation9], 0 }
   0x3   :  { %13 = vsyncpa [#allocation4], 0  ;;  %s507_s18 = smov [#allocation5]   ;;  %s367_s22 = scalar_lea.hbm %s620_s1, 256 }
   0x4   :  { %s29_s19 = sshll.u32 %s507_s18, 4  ;;  %p368_p0 = scmp.ne.s32.totalorder %s620_s1, %s367_s22  ;;  %s30_s19 = int_to_ptr.vmem [resolvable:$true] %s29_s19 }
   0x5   :  { %p371_p1 = scmp.lt.u32.totalorder %s367_s22, %s620_s1 }
   0x7   :  { %p373_p2 = pnand %p371_p1, %p368_p0 }
   0x9   :  { %376 = shalt.err (!%p373_p2)
}
   0xa   :  { %s377_s27 = scalar_lea.vmem %s30_s19, 256  ;;  %p382_p4 = scmp.lt.s32.totalorder %s30_s19, %s30_s19 }
   0xb   :  { %p378_p3 = scmp.ne.s32.totalorder %s30_s19, %s377_s27  ;;  %p383_p5 = scmp.lt.s32.totalorder %s377_s27, %s377_s27 }
   0xd   :  { %p384_p6 = por %p383_p5, %p382_p4 }
   0xf   :  { %p385_p7 = pnand %p384_p6, %p378_p3 }
  0x11   :  { %388 = shalt.err (!%p385_p7)
}
  0x12   :  { %s508_s28 = smov 64   ;;  %s509_s29 = smov 4  }
  0x13   :  { %35 = dma.hbm_to_vmem [thread:$0]  %s620_s1, 256, %s30_s19, [#allocation6], %s508_s28, %s508_s28, %s509_s29  }
  0x14   :  { %s510_s7 = smov [#allocation8]   ;;  %s511_s9 = smov [#allocation2]  }
  0x15   :  { %s51_s8 = sshll.u32 %s510_s7, 4  ;;  %s20_s10 = sshll.u32 %s511_s9, 4  ;;  %s52_s8 = int_to_ptr.vmem [resolvable:$true] %s51_s8  ;;  %s21_s10 = int_to_ptr.vmem [resolvable:$true] %s20_s10 }
  0x16   :  { %s389_s13 = scalar_lea.hbm %s622_s3, 1024 }
  0x17   :  { %p390_p8 = scmp.ne.s32.totalorder %s622_s3, %s389_s13  ;;  %p393_p9 = scmp.lt.u32.totalorder %s389_s13, %s622_s3 }
  0x19   :  { %p395_p10 = pnand %p393_p9, %p390_p8 }
  0x1b   :  { %398 = shalt.err (!%p395_p10)
}
  0x1c   :  { %s399_s1 = scalar_lea.vmem %s52_s8, 1024  ;;  %p404_p12 = scmp.lt.s32.totalorder %s52_s8, %s52_s8 }
  0x1d   :  { %p400_p11 = scmp.ne.s32.totalorder %s52_s8, %s399_s1  ;;  %p405_p13 = scmp.lt.s32.totalorder %s399_s1, %s399_s1 }
  0x1f   :  { %p406_p0 = por %p405_p13, %p404_p12 }
  0x21   :  { %p407_p1 = pnand %p406_p0, %p400_p11 }
  0x23   :  { %410 = shalt.err (!%p407_p1)
}
  0x24   :  { %57 = dma.hbm_to_vmem [thread:$0]  %s622_s3, 1024, %s52_s8, [#allocation9], %s508_s28, %s508_s28, %s509_s29  }
  0x25   :  { %s411_s22 = scalar_lea.hbm %s619_s0, 128 }
  0x26   :  { %p412_p2 = scmp.ne.s32.totalorder %s619_s0, %s411_s22  ;;  %p415_p3 = scmp.lt.u32.totalorder %s411_s22, %s619_s0 }
  0x28   :  { %p417_p4 = pnand %p415_p3, %p412_p2 }
  0x2a   :  { %420 = shalt.err (!%p417_p4)
}
  0x2b   :  { %s421_s27 = scalar_lea.vmem %s21_s10, 128  ;;  %p426_p6 = scmp.lt.s32.totalorder %s21_s10, %s21_s10 }
  0x2c   :  { %p422_p5 = scmp.ne.s32.totalorder %s21_s10, %s421_s27  ;;  %p427_p7 = scmp.lt.s32.totalorder %s421_s27, %s421_s27 }
  0x2e   :  { %p428_p8 = por %p427_p7, %p426_p6 }
  0x30   :  { %p429_p9 = pnand %p428_p8, %p422_p5 }
  0x32   :  { %432 = shalt.err (!%p429_p9)
}
  0x33   :  { %23 = dma.hbm_to_vmem [thread:$0]  %s619_s0, 128, %s21_s10, [#allocation3]  }
  0x34   :  { %s512_s29 = smov [#allocation7]   ;;  %s513_s6 = smov [#allocation10]  }
  0x35   :  { %s42_s30 = sshll.u32 %s512_s29, 4  ;;  %s64_s7 = sshll.u32 %s513_s6, 4  ;;  %s43_s30 = int_to_ptr.vmem [resolvable:$true] %s42_s30  ;;  %s65_s7 = int_to_ptr.vmem [resolvable:$true] %s64_s7 }
  0x36   :  { %s433_s11 = scalar_lea.hbm %s621_s2, 16 }
  0x37   :  { %p434_p10 = scmp.ne.s32.totalorder %s621_s2, %s433_s11  ;;  %p437_p11 = scmp.lt.u32.totalorder %s433_s11, %s621_s2 }
  0x39   :  { %p439_p12 = pnand %p437_p11, %p434_p10 }
  0x3b   :  { %442 = shalt.err (!%p439_p12)
}
  0x3c   :  { %s443_s0 = scalar_lea.vmem %s43_s30, 16  ;;  %s447_s10 = scalar_lea.vmem %s43_s30, 32 }
  0x3d   :  { %p444_p13 = scmp.ne.s32.totalorder %s43_s30, %s443_s0  ;;  %p448_p0 = scmp.lt.s32.totalorder %s43_s30, %s43_s30 }
  0x3e   :  { %p449_p1 = scmp.lt.s32.totalorder %s447_s10, %s443_s0 }
  0x40   :  { %p450_p2 = por %p449_p1, %p448_p0 }
  0x42   :  { %p451_p3 = pnand %p450_p2, %p444_p13 }
  0x44   :  { %454 = shalt.err (!%p451_p3)
}
  0x45   :  { %45 = dma.hbm_to_vmem [thread:$0]  %s621_s2, 16, %s43_s30, [#allocation6]  }
  0x46   :  { %s455_s19 = scalar_lea.hbm %s623_s4, 16 }
  0x47   :  { %p456_p4 = scmp.ne.s32.totalorder %s623_s4, %s455_s19  ;;  %p459_p5 = scmp.lt.u32.totalorder %s455_s19, %s623_s4 }
  0x49   :  { %p461_p6 = pnand %p459_p5, %p456_p4 }
  0x4b   :  { %464 = shalt.err (!%p461_p6)
}
  0x4c   :  { %s465_s24 = scalar_lea.vmem %s65_s7, 16  ;;  %s469_s25 = scalar_lea.vmem %s65_s7, 32 }
  0x4d   :  { %p466_p7 = scmp.ne.s32.totalorder %s65_s7, %s465_s24  ;;  %p470_p8 = scmp.lt.s32.totalorder %s65_s7, %s65_s7 }
  0x4e   :  { %p471_p9 = scmp.lt.s32.totalorder %s469_s25, %s465_s24 }
  0x50   :  { %p472_p10 = por %p471_p9, %p470_p8 }
  0x52   :  { %p473_p11 = pnand %p472_p10, %p466_p7 }
  0x54   :  { %476 = shalt.err (!%p473_p11)
}
  0x55   :  { %67 = dma.hbm_to_vmem [thread:$0]  %s623_s4, 16, %s65_s7, [#allocation9]  }
  0x56   :  { %499 = dma.done.wait [#allocation3], 128  }
  0x57   :  { %500 = vsyncadd [#allocation3], 4294967168 }
  0x58   :  { %501 = dma.done.wait [#allocation6], 272  }
  0x59   :  { %502 = vsyncadd [#allocation6], 4294967024 }
  0x5a   :  { %503 = dma.done.wait [#allocation9], 1040  }
  0x5b   :  { %504 = vsyncadd [#allocation9], 4294966256  ;;  %v514_v0 = vmov 0.0   ;;  %vm515_vm0 = vmmov 0   ;;  %v353_v1 = vld [vmem:[#allocation5] sm:$0xff]   ;;  %v354_v2 = vld [vmem:[#allocation5 + $0x8] sm:$0xff]  }
  0x5c   :  { %315 = vmatprep.subr.bf16.mxu0 %v514_v0  ;;  %319 = vmatprep.mubr.msk.bf16.mxu0 %vm515_vm0, %v514_v0  ;;  %v84_v3 = vld [vmem:[#allocation2] sm:$0xff]  ;;  %vm109_vm1 = vcmask 261120   ;;  %v357_v7 = vld [vmem:[#allocation8 + $0x10] sm:$0xff]   ;;  %v358_v8 = vld [vmem:[#allocation8 + $0x18] sm:$0xff]   ;;  %s516_s4 = smov [#allocation11]  }
  0x5d   :  { %323 = vmatprep.subr.bf16.mxu1 %v514_v0  ;;  %339 = vmatprep.mubr.msk.bf16.mxu1 %vm515_vm0, %v514_v0  ;;  %v355_v4 = vld [vmem:[#allocation8] sm:$0xff]   ;;  %v85_v5 = vpack.c.bf16 %v84_v3, %v84_v3  ;;  %v356_v6 = vld [vmem:[#allocation8 + $0x8] sm:$0xff]   ;;  %v361_v11 = vld [vmem:[#allocation8 + $0x30] sm:$0xff]   ;;  %s279_s27 = sshll.u32 %s516_s4, 4  ;;  %s280_s27 = int_to_ptr.vmem [resolvable:$true] %s279_s27 }
  0x5e   :  { %316 = vmatpush3.bf16.msra.mxu0 %v353_v1  ;;  %324 = vmatpush3.bf16.msra.mxu1 %v355_v4  ;;  %v359_v9 = vld [vmem:[#allocation8 + $0x20] sm:$0xff]   ;;  %v360_v10 = vld [vmem:[#allocation8 + $0x28] sm:$0xff]   ;;  %v362_v12 = vld [vmem:[#allocation8 + $0x38] sm:$0xff]   ;;  %s477_s3 = scalar_lea.vmem %s280_s27, 128  ;;  %p482_p13 = scmp.lt.s32.totalorder %s280_s27, %s280_s27 }
  0x5f   :  { %317 = vmatprep.subr.bf16.mxu0 %v514_v0  ;;  %325 = vmatprep.subr.bf16.mxu1 %v514_v0  ;;  %v290_v13 = vld [vmem:[#allocation7] ss:$0 sm:$0xff]  ;;  %v294_v21 = vld [vmem:[#allocation10] ss:$0 sm:$0xff]  ;;  %p478_p12 = scmp.ne.s32.totalorder %s280_s27, %s477_s3  ;;  %p483_p0 = scmp.lt.s32.totalorder %s477_s3, %s477_s3 }
  0x61   :  { %p484_p1 = por %p483_p0, %p482_p13 }
  0x62   :  { %318 = vmatpush3.bf16.msra.mxu0 %v354_v2  ;;  %326 = vmatpush3.bf16.msra.mxu1 %v356_v6 }
  0x63   :  { %327 = vmatprep.subr.bf16.mxu1 %v514_v0  ;;  %p485_p2 = pnand %p484_p1, %p478_p12 }
  0x65   :  { %320 = vmatmul.mubr.msk.bf16.vlgmr.msra.gmra.mrb[0].mxu0 %vm109_vm1, %v85_v5 }
  0x66   :  { %328 = vmatpush3.bf16.msra.mxu1 %v357_v7 }
  0x67   :  { %329 = vmatprep.subr.bf16.mxu1 %v514_v0 }
  0x6a   :  { %330 = vmatpush3.bf16.msra.mxu1 %v358_v8 }
  0x6b   :  { %331 = vmatprep.subr.bf16.mxu1 %v514_v0 }
  0x6e   :  { %332 = vmatpush3.bf16.msra.mxu1 %v359_v9 }
  0x6f   :  { %333 = vmatprep.subr.bf16.mxu1 %v514_v0 }
  0x72   :  { %334 = vmatpush3.bf16.msra.mxu1 %v360_v10 }
  0x73   :  { %335 = vmatprep.subr.bf16.mxu1 %v514_v0 }
  0x76   :  { %336 = vmatpush3.bf16.msra.mxu1 %v361_v11 }
  0x77   :  { %337 = vmatprep.subr.bf16.mxu1 %v514_v0 }
  0x7a   :  { %338 = vmatpush3.bf16.msra.mxu1 %v362_v12 }
 0x138   :  { %v147_v14 = vpop.f32.mrb[0].mxu0 }
 0x139   :  { %v148_v15 = vadd.f32 %v290_v13, %v147_v14  ;;  %v321_v16 = vpop.f32.mrb[1].mxu0 }
 0x13a   :  { %v150_v17 = vpop.f32.mrb[2].mxu0 }
 0x13b   :  { %v153_v18 = vmax.f32 %v148_v15, 0.0  ;;  %v322_v19 = vpop.f32.mrb[3].mxu0 }
 0x13d   :  { %v154_v20 = vpack.c.bf16 %v153_v18, %v153_v18 }
 0x13f   :  { %340 = vmatmul.mubr.bf16.vlgmr.msra.gmra.mrb[0].mxu1 %v154_v20 }
 0x212   :  { %v260_v22 = vpop.f32.mrb[0].mxu1 }
 0x213   :  { %v261_v23 = vadd.f32 %v294_v21, %v260_v22  ;;  %v341_v24 = vpop.f32.mrb[1].mxu1 }
 0x214   :  { %v263_v25 = vpop.f32.mrb[2].mxu1 }
 0x215   :  { %v266_v26 = vmax.f32 %v261_v23, -60.0  ;;  %v342_v27 = vpop.f32.mrb[3].mxu1 }
 0x217   :  { %v267_v28 = vsub.f32 0.0, %v266_v26 }
 0x219   :  { %v268_v29 = vmul.f32 1.442695, %v267_v28 }
 0x21b   :  { %363 = vpow2.f32 %v268_v29 }
 0x225   :  { %v364_v30 = vpop.eup %363 }
 0x226   :  { %v270_v31 = vadd.f32 1.0, %v364_v30 }
 0x228   :  { %365 = vrcp.f32 %v270_v31 }
 0x232   :  { %v366_v32 = vpop.eup %365 }
 0x233   :  { %272 = vst [vmem:[#allocation11] sm:$0xff] %v366_v32 }
 0x234   :  { %488 = shalt.err (!%p485_p2)
}
 0x235   :  { %s489_s30 = scalar_lea.hbm %s624_s5, 128 }
 0x236   :  { %p490_p3 = scmp.ne.s32.totalorder %s624_s5, %s489_s30  ;;  %p493_p4 = scmp.lt.u32.totalorder %s489_s30, %s624_s5 }
 0x238   :  { %p495_p5 = pnand %p493_p4, %p490_p3 }
 0x23a   :  { %498 = shalt.err (!%p495_p5)
}
 0x23b   :  { %282 = dma.vmem_to_hbm [thread:$0]  %s280_s27, 128, %s624_s5, [#allocation4]  }
 0x23c   :  { %505 = dma.done.wait [#allocation4], 128  }
 0x23d   :  { %506 = vsyncadd [#allocation4], 4294967168 }
 0x23e   :  { %286 = vsyncpa [#allocation3], 1 }
 0x23f   :  { %287 = vsyncpa [#allocation6], 1 }
 0x240   :  { %288 = vsyncpa [#allocation9], 1 }
 0x241   :  { %289 = vsyncpa [#allocation4], 1 }

</bundles_post_ra>
